<compile_context>
chip_gen: v7x
topology: tpu7x:2x2x1
jax: 0.10.0
libtpu: 0.0.40
codegen_flags: <defaults>
</compile_context>

<pallas_src>
import functools
import math

import jax
import jax.numpy as jnp
from jax.experimental import pallas as pl
from jax.experimental.pallas import tpu as pltpu

_EPS = 1e-5  # PyTorch LayerNorm default


def _round_up(v, m):
    return ((v + m - 1) // m) * m


# --------------------------------------------------------------------------
# Fully fused resblock kernel (one batch sample per grid step).
# --------------------------------------------------------------------------
def _resblock_kernel(x_ref, w1f_ref, w2f_ref, m_ref, ln_ref, o_ref, col_ref,
                     *, H, W, Cout, cp1, cp2):
    HW = H * W
    inv_hw = 1.0 / HW

    masks = m_ref[...]     # (8, HW) f32: one row per non-center tap, 0/1
    lnp = ln_ref[...]      # (8, HW): rows g1, b1, gE, bE, g2, b2, 0, 0

    def layernorm(y, gi, bi):
        # Two-pass (centered) variance for f32 stability.
        mean = jnp.sum(y, axis=-1, keepdims=True) * inv_hw
        c = y - mean
        var = jnp.sum(c * c, axis=-1, keepdims=True) * inv_hw
        return c * jax.lax.rsqrt(var + _EPS) * lnp[gi:gi + 1] + lnp[bi:bi + 1]

    def im2col(a, cp):
        # a: (cp, HW). Writes the 9 shifted+masked taps into the column
        # scratch at 8-sublane-aligned offsets k*cp -> one big matmul later.
        t = 0
        k = 0
        for dh in (-1, 0, 1):
            for dw in (-1, 0, 1):
                if dh == 0 and dw == 0:
                    col_ref[k * cp:(k + 1) * cp, :] = a
                else:
                    shift = dh * W + dw
                    shifted = pltpu.roll(a, (-shift) % HW, axis=1)
                    col_ref[k * cp:(k + 1) * cp, :] = shifted * masks[t:t + 1]
                    t += 1
                k += 1

    # ---- conv1 (3x3) fused with the 1x1 shortcut: single K=9*cp1 matmul ----
    im2col(x_ref[0], cp1)
    y = jnp.dot(w1f_ref[...], col_ref[0:9 * cp1, :],
                preferred_element_type=jnp.float32)        # (2*Cout, HW)
    a1 = jnp.maximum(layernorm(y[0:Cout], 0, 1), 0.0)      # conv1 + LN1 + ReLU
    sc = layernorm(y[Cout:2 * Cout], 2, 3)                 # 1x1 shortcut + LNE

    # ---- conv2 (3x3): single K=9*cp2 matmul, reusing the same scratch ----
    if Cout < cp2:
        a1 = jnp.concatenate(
            [a1, jnp.zeros((cp2 - Cout, HW), a1.dtype)], axis=0)
    im2col(a1, cp2)
    y2 = jnp.dot(w2f_ref[...], col_ref[0:9 * cp2, :],
                 preferred_element_type=jnp.float32)       # (Cout, HW)

    out = layernorm(y2, 4, 5) + sc
    o_ref[0] = jnp.maximum(out, 0.0)


# --------------------------------------------------------------------------
# Host-side weight / mask packing helpers (cheap XLA ops under jit).
# --------------------------------------------------------------------------
def _flatten_conv_w(w, cp):
    # OIHW (O, C, 3, 3) -> (O, 9*cp), column index = tap_k*cp + c,
    # tap_k = (dh+1)*3 + (dw+1).  Padded channel columns are zero.
    O, C, KH, KW = w.shape
    wf = w.transpose(0, 2, 3, 1).reshape(O, KH * KW, C)
    wf = jnp.pad(wf, ((0, 0), (0, 0), (0, cp - C)))
    return wf.reshape(O, KH * KW * cp)


def _build_tap_masks(H, W):
    HW = H * W
    idx = jnp.arange(HW, dtype=jnp.int32)
    hh = idx // W
    ww = idx % W
    rows = []
    for dh in (-1, 0, 1):
        for dw in (-1, 0, 1):
            if dh == 0 and dw == 0:
                continue
            m = ((hh + dh >= 0) & (hh + dh < H) &
                 (ww + dw >= 0) & (ww + dw < W))
            rows.append(m.astype(jnp.float32))
    return jnp.stack(rows, axis=0)   # (8, HW)


# --------------------------------------------------------------------------
# Wrapper.
# --------------------------------------------------------------------------
def resblock_forward(x, params, stride=1):
    """x: (N, Cin, H, W) float32 -> (N, Cout, H, W) float32."""
    # TODO(synk): stride=2 shortcut (MaxPool2d + 1x1 conv + LN) path not implemented.
    assert stride == 1, "this script exercises the stride=1, ch_in != ch_out branch"
    N, Cin, H, W = x.shape
    Cout = params["conv1_w"].shape[0]
    HW = H * W
    cp1 = _round_up(Cin, 8)    # padded channels per tap slot (conv1 / shortcut)
    cp2 = _round_up(Cout, 8)   # padded channels per tap slot (conv2)

    # Input: (N, cp1, HW), zero-padded channels so all im2col stores are
    # (8,128)-aligned.
    x_flat = jnp.pad(x.reshape(N, Cin, HW), ((0, 0), (0, cp1 - Cin), (0, 0)))

    # conv1 weight + fused 1x1 shortcut weight -> (2*Cout, 9*cp1).
    w1f = _flatten_conv_w(params["conv1_w"], cp1)
    we = params["convE_w"].reshape(Cout, Cin)
    we_rows = jnp.zeros((Cout, 9 * cp1), jnp.float32)
    we_rows = we_rows.at[:, 4 * cp1:4 * cp1 + Cin].set(we)   # center tap cols
    w1_fused = jnp.concatenate([w1f, we_rows], axis=0)

    # conv2 weight -> (Cout, 9*cp2).
    w2f = _flatten_conv_w(params["conv2_w"], cp2)

    # LayerNorm gamma/beta packed into one (8, HW) tile.
    ln_pack = jnp.stack([
        params["ln1_w"].reshape(HW), params["ln1_b"].reshape(HW),
        params["lnE_w"].reshape(HW), params["lnE_b"].reshape(HW),
        params["ln2_w"].reshape(HW), params["ln2_b"].reshape(HW),
        jnp.zeros((HW,), jnp.float32), jnp.zeros((HW,), jnp.float32),
    ], axis=0)

    masks = _build_tap_masks(H, W)   # (8, HW)

    kernel = functools.partial(_resblock_kernel, H=H, W=W, Cout=Cout,
                               cp1=cp1, cp2=cp2)

    out = pl.pallas_call(
        kernel,
        out_shape=jax.ShapeDtypeStruct((N, Cout, HW), jnp.float32),
        grid=(N,),
        in_specs=[
            pl.BlockSpec((1, cp1, HW), lambda n: (n, 0, 0)),          # x (per sample)
            pl.BlockSpec((2 * Cout, 9 * cp1), lambda n: (0, 0)),      # conv1 + shortcut
            pl.BlockSpec((Cout, 9 * cp2), lambda n: (0, 0)),          # conv2
            pl.BlockSpec((8, HW), lambda n: (0, 0)),                  # tap masks
            pl.BlockSpec((8, HW), lambda n: (0, 0)),                  # LN params
        ],
        out_specs=pl.BlockSpec((1, Cout, HW), lambda n: (n, 0, 0)),
        scratch_shapes=[pltpu.VMEM((9 * max(cp1, cp2), HW), jnp.float32)],
        compiler_params=pltpu.CompilerParams(
            dimension_semantics=("parallel",)),       # v7x megacore over N
    )(x_flat, w1_fused, w2f, masks, ln_pack)

    return out.reshape(N, Cout, H, W)


# --------------------------------------------------------------------------
# Parameter init (mirrors PyTorch defaults; biases kept to prove the kernel's
# bias-elision is numerically identical).
# --------------------------------------------------------------------------
def init_params(key, ch_in, ch_out, size):
    H, W = size
    ks = jax.random.split(key, 10)
    s1 = 1.0 / math.sqrt(ch_in * 9)
    s2 = 1.0 / math.sqrt(ch_out * 9)
    se = 1.0 / math.sqrt(ch_in)
    return {
        "conv1_w": jax.random.uniform(ks[0], (ch_out, ch_in, 3, 3), jnp.float32, -s1, s1),
        "conv1_b": jax.random.uniform(ks[1], (ch_out,), jnp.float32, -s1, s1),
        "ln1_w": 1.0 + 0.1 * jax.random.normal(ks[2], (H, W), jnp.float32),
        "ln1_b": 0.1 * jax.random.normal(ks[3], (H, W), jnp.float32),
        "conv2_w": jax.random.uniform(ks[4], (ch_out, ch_out, 3, 3), jnp.float32, -s2, s2),
        "conv2_b": jax.random.uniform(ks[5], (ch_out,), jnp.float32, -s2, s2),
        "ln2_w": 1.0 + 0.1 * jax.random.normal(ks[6], (H, W), jnp.float32),
        "ln2_b": 0.1 * jax.random.normal(ks[7], (H, W), jnp.float32),
        "convE_w": jax.random.uniform(ks[8], (ch_out, ch_in, 1, 1), jnp.float32, -se, se),
        "convE_b": jax.random.uniform(ks[9], (ch_out,), jnp.float32, -se, se),
        "lnE_w": jnp.ones((H, W), jnp.float32),
        "lnE_b": jnp.zeros((H, W), jnp.float32),
    }


# --------------------------------------------------------------------------
# Pure-JAX reference (mirrors the PyTorch forward, biases included).
# --------------------------------------------------------------------------
def _reference(x, params):
    def conv2d(x, w, b, stride, pad):
        y = jax.lax.conv_general_dilated(
            x, w, (stride, stride), [(pad, pad), (pad, pad)],
            dimension_numbers=("NCHW", "OIHW", "NCHW"))
        return y + b[None, :, None, None]

    def ln(x, g, b):
        mean = x.mean(axis=(-2, -1), keepdims=True)
        var = ((x - mean) ** 2).mean(axis=(-2, -1), keepdims=True)
        return (x - mean) / jnp.sqrt(var + _EPS) * g + b

    out = jax.nn.relu(ln(conv2d(x, params["conv1_w"], params["conv1_b"], 1, 1),
                         params["ln1_w"], params["ln1_b"]))
    out = ln(conv2d(out, params["conv2_w"], params["conv2_b"], 1, 1),
             params["ln2_w"], params["ln2_b"])
    sc = ln(conv2d(x, params["convE_w"], params["convE_b"], 1, 0),
            params["lnE_w"], params["lnE_b"])
    return jax.nn.relu(out + sc)


if __name__ == "__main__":
    N, CH_IN, CH_OUT, H, W = 2, 4, 8, 16, 16

    key = jax.random.PRNGKey(0)
    kx, kp = jax.random.split(key)
    x = jax.random.normal(kx, (N, CH_IN, H, W), jnp.float32)
    params = init_params(kp, CH_IN, CH_OUT, (H, W))

    out = jax.jit(resblock_forward)(x, params)
    out = jax.block_until_ready(out)

    ref = _reference(x, params)
    assert out.shape == (N, CH_OUT, H, W)
    assert jnp.allclose(out, ref, rtol=1e-4, atol=1e-4), \
        f"max abs err {jnp.max(jnp.abs(out - ref))}"

    print("KERNEL_OK")
</pallas_src>

<mosaic_0001>
module attributes {stable_mosaic.version = 11 : i64} {
  func.func @_resblock_kernel(%arg0: i32, %arg1: memref<1x8x256xf32, #tpu.memory_space<vmem>>, %arg2: memref<16x72xf32, #tpu.memory_space<vmem>>, %arg3: memref<8x72xf32, #tpu.memory_space<vmem>>, %arg4: memref<8x256xf32, #tpu.memory_space<vmem>>, %arg5: memref<8x256xf32, #tpu.memory_space<vmem>>, %arg6: memref<1x8x256xf32, #tpu.memory_space<vmem>>, %arg7: memref<72x256xf32, #tpu.memory_space<vmem>>) attributes {dimension_semantics = [#tpu.dimension_semantics<parallel>], iteration_bounds = array<i64: 2>, scalar_prefetch = 0 : i64, scratch_operands = 1 : i64, tpu.core_type = #tpu.core_type<tc>, window_params = [{transform_indices = @transform_0, window_bounds = array<i64: 1, 8, 256>}, {pipeline_mode = #tpu.pipeline_mode<synchronous>, transform_indices = @transform_1, window_bounds = array<i64: 16, 72>}, {pipeline_mode = #tpu.pipeline_mode<synchronous>, transform_indices = @transform_2, window_bounds = array<i64: 8, 72>}, {pipeline_mode = #tpu.pipeline_mode<synchronous>, transform_indices = @transform_3, window_bounds = array<i64: 8, 256>}, {pipeline_mode = #tpu.pipeline_mode<synchronous>, transform_indices = @transform_4, window_bounds = array<i64: 8, 256>}, {transform_indices = @transform_5, window_bounds = array<i64: 1, 8, 256>}]} {
    %c0 = arith.constant 0 : index
    %c0_0 = arith.constant 0 : index
    %0 = vector.load %arg4[%c0, %c0_0] : memref<8x256xf32, #tpu.memory_space<vmem>>, vector<8x256xf32>
    %c0_1 = arith.constant 0 : index
    %c0_2 = arith.constant 0 : index
    %1 = vector.load %arg5[%c0_1, %c0_2] : memref<8x256xf32, #tpu.memory_space<vmem>>, vector<8x256xf32>
    %c0_3 = arith.constant 0 : index
    %c0_4 = arith.constant 0 : index
    %c0_5 = arith.constant 0 : index
    %2 = vector.load %arg1[%c0_3, %c0_4, %c0_5] : memref<1x8x256xf32, #tpu.memory_space<vmem>>, vector<1x8x256xf32>
    %3 = vector.shape_cast %2 : vector<1x8x256xf32> to vector<8x256xf32>
    %c17_i32 = arith.constant 17 : i32
    %4 = tpu.dynamic_rotate %3 by %c17_i32 dim 1 : vector<8x256xf32>, i32 -> vector<8x256xf32>
    %5 = vector.extract_strided_slice %0 {offsets = [0, 0], sizes = [1, 256], strides = [1, 1]} : vector<8x256xf32> to vector<1x256xf32>
    %6 = vector.broadcast %5 : vector<1x256xf32> to vector<8x256xf32>
    %7 = arith.mulf %4, %6 : vector<8x256xf32>
    %c0_6 = arith.constant 0 : index
    %c0_7 = arith.constant 0 : index
    %8 = vector.load %arg7[%c0_6, %c0_7] : memref<72x256xf32, #tpu.memory_space<vmem>>, vector<8x256xf32>
    tpu.vector_store %arg7[%c0_6, %c0_7], %7 {strides = array<i32>} : memref<72x256xf32, #tpu.memory_space<vmem>>, vector<8x256xf32>,
    %c16_i32 = arith.constant 16 : i32
    %9 = tpu.dynamic_rotate %3 by %c16_i32 dim 1 : vector<8x256xf32>, i32 -> vector<8x256xf32>
    %10 = vector.extract_strided_slice %0 {offsets = [1, 0], sizes = [1, 256], strides = [1, 1]} : vector<8x256xf32> to vector<1x256xf32>
    %11 = vector.broadcast %10 : vector<1x256xf32> to vector<8x256xf32>
    %12 = arith.mulf %9, %11 : vector<8x256xf32>
    %c8 = arith.constant 8 : index
    %c0_8 = arith.constant 0 : index
    %13 = vector.load %arg7[%c8, %c0_8] : memref<72x256xf32, #tpu.memory_space<vmem>>, vector<8x256xf32>
    tpu.vector_store %arg7[%c8, %c0_8], %12 {strides = array<i32>} : memref<72x256xf32, #tpu.memory_space<vmem>>, vector<8x256xf32>,
    %c15_i32 = arith.constant 15 : i32
    %14 = tpu.dynamic_rotate %3 by %c15_i32 dim 1 : vector<8x256xf32>, i32 -> vector<8x256xf32>
    %15 = vector.extract_strided_slice %0 {offsets = [2, 0], sizes = [1, 256], strides = [1, 1]} : vector<8x256xf32> to vector<1x256xf32>
    %16 = vector.broadcast %15 : vector<1x256xf32> to vector<8x256xf32>
    %17 = arith.mulf %14, %16 : vector<8x256xf32>
    %c16 = arith.constant 16 : index
    %c0_9 = arith.constant 0 : index
    %18 = vector.load %arg7[%c16, %c0_9] : memref<72x256xf32, #tpu.memory_space<vmem>>, vector<8x256xf32>
    tpu.vector_store %arg7[%c16, %c0_9], %17 {strides = array<i32>} : memref<72x256xf32, #tpu.memory_space<vmem>>, vector<8x256xf32>,
    %c1_i32 = arith.constant 1 : i32
    %19 = tpu.dynamic_rotate %3 by %c1_i32 dim 1 : vector<8x256xf32>, i32 -> vector<8x256xf32>
    %20 = vector.extract_strided_slice %0 {offsets = [3, 0], sizes = [1, 256], strides = [1, 1]} : vector<8x256xf32> to vector<1x256xf32>
    %21 = vector.broadcast %20 : vector<1x256xf32> to vector<8x256xf32>
    %22 = arith.mulf %19, %21 : vector<8x256xf32>
    %c24 = arith.constant 24 : index
    %c0_10 = arith.constant 0 : index
    %23 = vector.load %arg7[%c24, %c0_10] : memref<72x256xf32, #tpu.memory_space<vmem>>, vector<8x256xf32>
    tpu.vector_store %arg7[%c24, %c0_10], %22 {strides = array<i32>} : memref<72x256xf32, #tpu.memory_space<vmem>>, vector<8x256xf32>,
    %c32 = arith.constant 32 : index
    %c0_11 = arith.constant 0 : index
    %24 = vector.load %arg7[%c32, %c0_11] : memref<72x256xf32, #tpu.memory_space<vmem>>, vector<8x256xf32>
    tpu.vector_store %arg7[%c32, %c0_11], %3 {strides = array<i32>} : memref<72x256xf32, #tpu.memory_space<vmem>>, vector<8x256xf32>,
    %c255_i32 = arith.constant 255 : i32
    %25 = tpu.dynamic_rotate %3 by %c255_i32 dim 1 : vector<8x256xf32>, i32 -> vector<8x256xf32>
    %26 = vector.extract_strided_slice %0 {offsets = [4, 0], sizes = [1, 256], strides = [1, 1]} : vector<8x256xf32> to vector<1x256xf32>
    %27 = vector.broadcast %26 : vector<1x256xf32> to vector<8x256xf32>
    %28 = arith.mulf %25, %27 : vector<8x256xf32>
    %c40 = arith.constant 40 : index
    %c0_12 = arith.constant 0 : index
    %29 = vector.load %arg7[%c40, %c0_12] : memref<72x256xf32, #tpu.memory_space<vmem>>, vector<8x256xf32>
    tpu.vector_store %arg7[%c40, %c0_12], %28 {strides = array<i32>} : memref<72x256xf32, #tpu.memory_space<vmem>>, vector<8x256xf32>,
    %c241_i32 = arith.constant 241 : i32
    %30 = tpu.dynamic_rotate %3 by %c241_i32 dim 1 : vector<8x256xf32>, i32 -> vector<8x256xf32>
    %31 = vector.extract_strided_slice %0 {offsets = [5, 0], sizes = [1, 256], strides = [1, 1]} : vector<8x256xf32> to vector<1x256xf32>
    %32 = vector.broadcast %31 : vector<1x256xf32> to vector<8x256xf32>
    %33 = arith.mulf %30, %32 : vector<8x256xf32>
    %c48 = arith.constant 48 : index
    %c0_13 = arith.constant 0 : index
    %34 = vector.load %arg7[%c48, %c0_13] : memref<72x256xf32, #tpu.memory_space<vmem>>, vector<8x256xf32>
    tpu.vector_store %arg7[%c48, %c0_13], %33 {strides = array<i32>} : memref<72x256xf32, #tpu.memory_space<vmem>>, vector<8x256xf32>,
    %c240_i32 = arith.constant 240 : i32
    %35 = tpu.dynamic_rotate %3 by %c240_i32 dim 1 : vector<8x256xf32>, i32 -> vector<8x256xf32>
    %36 = vector.extract_strided_slice %0 {offsets = [6, 0], sizes = [1, 256], strides = [1, 1]} : vector<8x256xf32> to vector<1x256xf32>
    %37 = vector.broadcast %36 : vector<1x256xf32> to vector<8x256xf32>
    %38 = arith.mulf %35, %37 : vector<8x256xf32>
    %c56 = arith.constant 56 : index
    %c0_14 = arith.constant 0 : index
    %39 = vector.load %arg7[%c56, %c0_14] : memref<72x256xf32, #tpu.memory_space<vmem>>, vector<8x256xf32>
    tpu.vector_store %arg7[%c56, %c0_14], %38 {strides = array<i32>} : memref<72x256xf32, #tpu.memory_space<vmem>>, vector<8x256xf32>,
    %c239_i32 = arith.constant 239 : i32
    %40 = tpu.dynamic_rotate %3 by %c239_i32 dim 1 : vector<8x256xf32>, i32 -> vector<8x256xf32>
    %41 = vector.extract_strided_slice %0 {offsets = [7, 0], sizes = [1, 256], strides = [1, 1]} : vector<8x256xf32> to vector<1x256xf32>
    %42 = vector.broadcast %41 : vector<1x256xf32> to vector<8x256xf32>
    %43 = arith.mulf %40, %42 : vector<8x256xf32>
    %c64 = arith.constant 64 : index
    %c0_15 = arith.constant 0 : index
    %44 = vector.load %arg7[%c64, %c0_15] : memref<72x256xf32, #tpu.memory_space<vmem>>, vector<8x256xf32>
    tpu.vector_store %arg7[%c64, %c0_15], %43 {strides = array<i32>} : memref<72x256xf32, #tpu.memory_space<vmem>>, vector<8x256xf32>,
    %c0_16 = arith.constant 0 : index
    %c0_17 = arith.constant 0 : index
    %45 = vector.load %arg2[%c0_16, %c0_17] : memref<16x72xf32, #tpu.memory_space<vmem>>, vector<16x72xf32>
    %c0_18 = arith.constant 0 : index
    %c0_19 = arith.constant 0 : index
    %46 = vector.load %arg7[%c0_18, %c0_19] : memref<72x256xf32, #tpu.memory_space<vmem>>, vector<72x256xf32>
    %cst = arith.constant dense<0.000000e+00> : vector<16x256xf32>
    %47 = tpu.matmul %45, %46, %cst {dimension_numbers = #tpu.dot_dimension_numbers<[1], [0], [0], [1], [0, 0, 1, 1], [], []>} : vector<16x72xf32>, vector<72x256xf32>, vector<16x256xf32> -> vector<16x256xf32>
    %48 = vector.extract_strided_slice %47 {offsets = [0, 0], sizes = [8, 256], strides = [1, 1]} : vector<16x256xf32> to vector<8x256xf32>
    %cst_20 = arith.constant dense<0.000000e+00> : vector<8xf32>
    %49 = vector.multi_reduction <add>, %48, %cst_20 [1] : vector<8x256xf32> to vector<8xf32>
    %50 = vector.shape_cast %49 : vector<8xf32> to vector<8x1xf32>
    %cst_21 = arith.constant 3.906250e-03 : f32
    %51 = vector.broadcast %cst_21 : f32 to vector<8x1xf32>
    %52 = arith.mulf %50, %51 : vector<8x1xf32>
    %53 = vector.broadcast %52 : vector<8x1xf32> to vector<8x256xf32>
    %54 = arith.subf %48, %53 : vector<8x256xf32>
    %55 = arith.mulf %54, %54 : vector<8x256xf32>
    %cst_22 = arith.constant dense<0.000000e+00> : vector<8xf32>
    %56 = vector.multi_reduction <add>, %55, %cst_22 [1] : vector<8x256xf32> to vector<8xf32>
    %57 = vector.shape_cast %56 : vector<8xf32> to vector<8x1xf32>
    %cst_23 = arith.constant 3.906250e-03 : f32
    %58 = vector.broadcast %cst_23 : f32 to vector<8x1xf32>
    %59 = arith.mulf %57, %58 : vector<8x1xf32>
    %cst_24 = arith.constant 9.99999974E-6 : f32
    %60 = vector.broadcast %cst_24 : f32 to vector<8x1xf32>
    %61 = arith.addf %59, %60 : vector<8x1xf32>
    %62 = math.rsqrt %61 : vector<8x1xf32>
    %63 = vector.broadcast %62 : vector<8x1xf32> to vector<8x256xf32>
    %64 = arith.mulf %54, %63 : vector<8x256xf32>
    %65 = vector.extract_strided_slice %1 {offsets = [0, 0], sizes = [1, 256], strides = [1, 1]} : vector<8x256xf32> to vector<1x256xf32>
    %66 = vector.broadcast %65 : vector<1x256xf32> to vector<8x256xf32>
    %67 = arith.mulf %64, %66 : vector<8x256xf32>
    %68 = vector.extract_strided_slice %1 {offsets = [1, 0], sizes = [1, 256], strides = [1, 1]} : vector<8x256xf32> to vector<1x256xf32>
    %69 = vector.broadcast %68 : vector<1x256xf32> to vector<8x256xf32>
    %70 = arith.addf %67, %69 : vector<8x256xf32>
    %cst_25 = arith.constant 0.000000e+00 : f32
    %71 = vector.broadcast %cst_25 : f32 to vector<8x256xf32>
    %72 = arith.maximumf %70, %71 : vector<8x256xf32>
    %73 = vector.extract_strided_slice %47 {offsets = [8, 0], sizes = [8, 256], strides = [1, 1]} : vector<16x256xf32> to vector<8x256xf32>
    %cst_26 = arith.constant dense<0.000000e+00> : vector<8xf32>
    %74 = vector.multi_reduction <add>, %73, %cst_26 [1] : vector<8x256xf32> to vector<8xf32>
    %75 = vector.shape_cast %74 : vector<8xf32> to vector<8x1xf32>
    %cst_27 = arith.constant 3.906250e-03 : f32
    %76 = vector.broadcast %cst_27 : f32 to vector<8x1xf32>
    %77 = arith.mulf %75, %76 : vector<8x1xf32>
    %78 = vector.broadcast %77 : vector<8x1xf32> to vector<8x256xf32>
    %79 = arith.subf %73, %78 : vector<8x256xf32>
    %80 = arith.mulf %79, %79 : vector<8x256xf32>
    %cst_28 = arith.constant dense<0.000000e+00> : vector<8xf32>
    %81 = vector.multi_reduction <add>, %80, %cst_28 [1] : vector<8x256xf32> to vector<8xf32>
    %82 = vector.shape_cast %81 : vector<8xf32> to vector<8x1xf32>
    %cst_29 = arith.constant 3.906250e-03 : f32
    %83 = vector.broadcast %cst_29 : f32 to vector<8x1xf32>
    %84 = arith.mulf %82, %83 : vector<8x1xf32>
    %cst_30 = arith.constant 9.99999974E-6 : f32
    %85 = vector.broadcast %cst_30 : f32 to vector<8x1xf32>
    %86 = arith.addf %84, %85 : vector<8x1xf32>
    %87 = math.rsqrt %86 : vector<8x1xf32>
    %88 = vector.broadcast %87 : vector<8x1xf32> to vector<8x256xf32>
    %89 = arith.mulf %79, %88 : vector<8x256xf32>
    %90 = vector.extract_strided_slice %1 {offsets = [2, 0], sizes = [1, 256], strides = [1, 1]} : vector<8x256xf32> to vector<1x256xf32>
    %91 = vector.broadcast %90 : vector<1x256xf32> to vector<8x256xf32>
    %92 = arith.mulf %89, %91 : vector<8x256xf32>
    %93 = vector.extract_strided_slice %1 {offsets = [3, 0], sizes = [1, 256], strides = [1, 1]} : vector<8x256xf32> to vector<1x256xf32>
    %94 = vector.broadcast %93 : vector<1x256xf32> to vector<8x256xf32>
    %95 = arith.addf %92, %94 : vector<8x256xf32>
    %c17_i32_31 = arith.constant 17 : i32
    %96 = tpu.dynamic_rotate %72 by %c17_i32_31 dim 1 : vector<8x256xf32>, i32 -> vector<8x256xf32>
    %97 = vector.extract_strided_slice %0 {offsets = [0, 0], sizes = [1, 256], strides = [1, 1]} : vector<8x256xf32> to vector<1x256xf32>
    %98 = vector.broadcast %97 : vector<1x256xf32> to vector<8x256xf32>
    %99 = arith.mulf %96, %98 : vector<8x256xf32>
    %c0_32 = arith.constant 0 : index
    %c0_33 = arith.constant 0 : index
    %100 = vector.load %arg7[%c0_32, %c0_33] : memref<72x256xf32, #tpu.memory_space<vmem>>, vector<8x256xf32>
    tpu.vector_store %arg7[%c0_32, %c0_33], %99 {strides = array<i32>} : memref<72x256xf32, #tpu.memory_space<vmem>>, vector<8x256xf32>,
    %c16_i32_34 = arith.constant 16 : i32
    %101 = tpu.dynamic_rotate %72 by %c16_i32_34 dim 1 : vector<8x256xf32>, i32 -> vector<8x256xf32>
    %102 = vector.extract_strided_slice %0 {offsets = [1, 0], sizes = [1, 256], strides = [1, 1]} : vector<8x256xf32> to vector<1x256xf32>
    %103 = vector.broadcast %102 : vector<1x256xf32> to vector<8x256xf32>
    %104 = arith.mulf %101, %103 : vector<8x256xf32>
    %c8_35 = arith.constant 8 : index
    %c0_36 = arith.constant 0 : index
    %105 = vector.load %arg7[%c8_35, %c0_36] : memref<72x256xf32, #tpu.memory_space<vmem>>, vector<8x256xf32>
    tpu.vector_store %arg7[%c8_35, %c0_36], %104 {strides = array<i32>} : memref<72x256xf32, #tpu.memory_space<vmem>>, vector<8x256xf32>,
    %c15_i32_37 = arith.constant 15 : i32
    %106 = tpu.dynamic_rotate %72 by %c15_i32_37 dim 1 : vector<8x256xf32>, i32 -> vector<8x256xf32>
    %107 = vector.extract_strided_slice %0 {offsets = [2, 0], sizes = [1, 256], strides = [1, 1]} : vector<8x256xf32> to vector<1x256xf32>
    %108 = vector.broadcast %107 : vector<1x256xf32> to vector<8x256xf32>
    %109 = arith.mulf %106, %108 : vector<8x256xf32>
    %c16_38 = arith.constant 16 : index
    %c0_39 = arith.constant 0 : index
    %110 = vector.load %arg7[%c16_38, %c0_39] : memref<72x256xf32, #tpu.memory_space<vmem>>, vector<8x256xf32>
    tpu.vector_store %arg7[%c16_38, %c0_39], %109 {strides = array<i32>} : memref<72x256xf32, #tpu.memory_space<vmem>>, vector<8x256xf32>,
    %c1_i32_40 = arith.constant 1 : i32
    %111 = tpu.dynamic_rotate %72 by %c1_i32_40 dim 1 : vector<8x256xf32>, i32 -> vector<8x256xf32>
    %112 = vector.extract_strided_slice %0 {offsets = [3, 0], sizes = [1, 256], strides = [1, 1]} : vector<8x256xf32> to vector<1x256xf32>
    %113 = vector.broadcast %112 : vector<1x256xf32> to vector<8x256xf32>
    %114 = arith.mulf %111, %113 : vector<8x256xf32>
    %c24_41 = arith.constant 24 : index
    %c0_42 = arith.constant 0 : index
    %115 = vector.load %arg7[%c24_41, %c0_42] : memref<72x256xf32, #tpu.memory_space<vmem>>, vector<8x256xf32>
    tpu.vector_store %arg7[%c24_41, %c0_42], %114 {strides = array<i32>} : memref<72x256xf32, #tpu.memory_space<vmem>>, vector<8x256xf32>,
    %c32_43 = arith.constant 32 : index
    %c0_44 = arith.constant 0 : index
    %116 = vector.load %arg7[%c32_43, %c0_44] : memref<72x256xf32, #tpu.memory_space<vmem>>, vector<8x256xf32>
    tpu.vector_store %arg7[%c32_43, %c0_44], %72 {strides = array<i32>} : memref<72x256xf32, #tpu.memory_space<vmem>>, vector<8x256xf32>,
    %c255_i32_45 = arith.constant 255 : i32
    %117 = tpu.dynamic_rotate %72 by %c255_i32_45 dim 1 : vector<8x256xf32>, i32 -> vector<8x256xf32>
    %118 = vector.extract_strided_slice %0 {offsets = [4, 0], sizes = [1, 256], strides = [1, 1]} : vector<8x256xf32> to vector<1x256xf32>
    %119 = vector.broadcast %118 : vector<1x256xf32> to vector<8x256xf32>
    %120 = arith.mulf %117, %119 : vector<8x256xf32>
    %c40_46 = arith.constant 40 : index
    %c0_47 = arith.constant 0 : index
    %121 = vector.load %arg7[%c40_46, %c0_47] : memref<72x256xf32, #tpu.memory_space<vmem>>, vector<8x256xf32>
    tpu.vector_store %arg7[%c40_46, %c0_47], %120 {strides = array<i32>} : memref<72x256xf32, #tpu.memory_space<vmem>>, vector<8x256xf32>,
    %c241_i32_48 = arith.constant 241 : i32
    %122 = tpu.dynamic_rotate %72 by %c241_i32_48 dim 1 : vector<8x256xf32>, i32 -> vector<8x256xf32>
    %123 = vector.extract_strided_slice %0 {offsets = [5, 0], sizes = [1, 256], strides = [1, 1]} : vector<8x256xf32> to vector<1x256xf32>
    %124 = vector.broadcast %123 : vector<1x256xf32> to vector<8x256xf32>
    %125 = arith.mulf %122, %124 : vector<8x256xf32>
    %c48_49 = arith.constant 48 : index
    %c0_50 = arith.constant 0 : index
    %126 = vector.load %arg7[%c48_49, %c0_50] : memref<72x256xf32, #tpu.memory_space<vmem>>, vector<8x256xf32>
    tpu.vector_store %arg7[%c48_49, %c0_50], %125 {strides = array<i32>} : memref<72x256xf32, #tpu.memory_space<vmem>>, vector<8x256xf32>,
    %c240_i32_51 = arith.constant 240 : i32
    %127 = tpu.dynamic_rotate %72 by %c240_i32_51 dim 1 : vector<8x256xf32>, i32 -> vector<8x256xf32>
    %128 = vector.extract_strided_slice %0 {offsets = [6, 0], sizes = [1, 256], strides = [1, 1]} : vector<8x256xf32> to vector<1x256xf32>
    %129 = vector.broadcast %128 : vector<1x256xf32> to vector<8x256xf32>
    %130 = arith.mulf %127, %129 : vector<8x256xf32>
    %c56_52 = arith.constant 56 : index
    %c0_53 = arith.constant 0 : index
    %131 = vector.load %arg7[%c56_52, %c0_53] : memref<72x256xf32, #tpu.memory_space<vmem>>, vector<8x256xf32>
    tpu.vector_store %arg7[%c56_52, %c0_53], %130 {strides = array<i32>} : memref<72x256xf32, #tpu.memory_space<vmem>>, vector<8x256xf32>,
    %c239_i32_54 = arith.constant 239 : i32
    %132 = tpu.dynamic_rotate %72 by %c239_i32_54 dim 1 : vector<8x256xf32>, i32 -> vector<8x256xf32>
    %133 = vector.extract_strided_slice %0 {offsets = [7, 0], sizes = [1, 256], strides = [1, 1]} : vector<8x256xf32> to vector<1x256xf32>
    %134 = vector.broadcast %133 : vector<1x256xf32> to vector<8x256xf32>
    %135 = arith.mulf %132, %134 : vector<8x256xf32>
    %c64_55 = arith.constant 64 : index
    %c0_56 = arith.constant 0 : index
    %136 = vector.load %arg7[%c64_55, %c0_56] : memref<72x256xf32, #tpu.memory_space<vmem>>, vector<8x256xf32>
    tpu.vector_store %arg7[%c64_55, %c0_56], %135 {strides = array<i32>} : memref<72x256xf32, #tpu.memory_space<vmem>>, vector<8x256xf32>,
    %c0_57 = arith.constant 0 : index
    %c0_58 = arith.constant 0 : index
    %137 = vector.load %arg3[%c0_57, %c0_58] : memref<8x72xf32, #tpu.memory_space<vmem>>, vector<8x72xf32>
    %c0_59 = arith.constant 0 : index
    %c0_60 = arith.constant 0 : index
    %138 = vector.load %arg7[%c0_59, %c0_60] : memref<72x256xf32, #tpu.memory_space<vmem>>, vector<72x256xf32>
    %cst_61 = arith.constant dense<0.000000e+00> : vector<8x256xf32>
    %139 = tpu.matmul %137, %138, %cst_61 {dimension_numbers = #tpu.dot_dimension_numbers<[1], [0], [0], [1], [0, 0, 1, 1], [], []>} : vector<8x72xf32>, vector<72x256xf32>, vector<8x256xf32> -> vector<8x256xf32>
    %cst_62 = arith.constant dense<0.000000e+00> : vector<8xf32>
    %140 = vector.multi_reduction <add>, %139, %cst_62 [1] : vector<8x256xf32> to vector<8xf32>
    %141 = vector.shape_cast %140 : vector<8xf32> to vector<8x1xf32>
    %cst_63 = arith.constant 3.906250e-03 : f32
    %142 = vector.broadcast %cst_63 : f32 to vector<8x1xf32>
    %143 = arith.mulf %141, %142 : vector<8x1xf32>
    %144 = vector.broadcast %143 : vector<8x1xf32> to vector<8x256xf32>
    %145 = arith.subf %139, %144 : vector<8x256xf32>
    %146 = arith.mulf %145, %145 : vector<8x256xf32>
    %cst_64 = arith.constant dense<0.000000e+00> : vector<8xf32>
    %147 = vector.multi_reduction <add>, %146, %cst_64 [1] : vector<8x256xf32> to vector<8xf32>
    %148 = vector.shape_cast %147 : vector<8xf32> to vector<8x1xf32>
    %cst_65 = arith.constant 3.906250e-03 : f32
    %149 = vector.broadcast %cst_65 : f32 to vector<8x1xf32>
    %150 = arith.mulf %148, %149 : vector<8x1xf32>
    %cst_66 = arith.constant 9.99999974E-6 : f32
    %151 = vector.broadcast %cst_66 : f32 to vector<8x1xf32>
    %152 = arith.addf %150, %151 : vector<8x1xf32>
    %153 = math.rsqrt %152 : vector<8x1xf32>
    %154 = vector.broadcast %153 : vector<8x1xf32> to vector<8x256xf32>
    %155 = arith.mulf %145, %154 : vector<8x256xf32>
    %156 = vector.extract_strided_slice %1 {offsets = [4, 0], sizes = [1, 256], strides = [1, 1]} : vector<8x256xf32> to vector<1x256xf32>
    %157 = vector.broadcast %156 : vector<1x256xf32> to vector<8x256xf32>
    %158 = arith.mulf %155, %157 : vector<8x256xf32>
    %159 = vector.extract_strided_slice %1 {offsets = [5, 0], sizes = [1, 256], strides = [1, 1]} : vector<8x256xf32> to vector<1x256xf32>
    %160 = vector.broadcast %159 : vector<1x256xf32> to vector<8x256xf32>
    %161 = arith.addf %158, %160 : vector<8x256xf32>
    %162 = arith.addf %161, %95 : vector<8x256xf32>
    %cst_67 = arith.constant 0.000000e+00 : f32
    %163 = vector.broadcast %cst_67 : f32 to vector<8x256xf32>
    %164 = arith.maximumf %162, %163 : vector<8x256xf32>
    %c0_68 = arith.constant 0 : index
    %c0_69 = arith.constant 0 : index
    %c0_70 = arith.constant 0 : index
    %165 = vector.load %arg6[%c0_68, %c0_69, %c0_70] : memref<1x8x256xf32, #tpu.memory_space<vmem>>, vector<1x8x256xf32>
    %166 = vector.shape_cast %165 : vector<1x8x256xf32> to vector<8x256xf32>
    %167 = vector.shape_cast %164 : vector<8x256xf32> to vector<1x8x256xf32>
    tpu.vector_store %arg6[%c0_68, %c0_69, %c0_70], %167 {strides = array<i32>} : memref<1x8x256xf32, #tpu.memory_space<vmem>>, vector<1x8x256xf32>,
    return
  }
  func.func @transform_0(%arg0: i32) -> (i32, i32, i32) {
    %c0_i32 = arith.constant 0 : i32
    %c0_i32_0 = arith.constant 0 : i32
    %c0_i32_1 = arith.constant 0 : i32
    return %arg0, %c0_i32, %c0_i32_0 : i32, i32, i32
  }
  func.func @transform_1(%arg0: i32) -> (i32, i32) {
    %c0_i32 = arith.constant 0 : i32
    %c0_i32_0 = arith.constant 0 : i32
    %c0_i32_1 = arith.constant 0 : i32
    return %c0_i32, %c0_i32_0 : i32, i32
  }
  func.func @transform_2(%arg0: i32) -> (i32, i32) {
    %c0_i32 = arith.constant 0 : i32
    %c0_i32_0 = arith.constant 0 : i32
    %c0_i32_1 = arith.constant 0 : i32
    return %c0_i32, %c0_i32_0 : i32, i32
  }
  func.func @transform_3(%arg0: i32) -> (i32, i32) {
    %c0_i32 = arith.constant 0 : i32
    %c0_i32_0 = arith.constant 0 : i32
    %c0_i32_1 = arith.constant 0 : i32
    return %c0_i32, %c0_i32_0 : i32, i32
  }
  func.func @transform_4(%arg0: i32) -> (i32, i32) {
    %c0_i32 = arith.constant 0 : i32
    %c0_i32_0 = arith.constant 0 : i32
    %c0_i32_1 = arith.constant 0 : i32
    return %c0_i32, %c0_i32_0 : i32, i32
  }
  func.func @transform_5(%arg0: i32) -> (i32, i32, i32) {
    %c0_i32 = arith.constant 0 : i32
    %c0_i32_0 = arith.constant 0 : i32
    %c0_i32_1 = arith.constant 0 : i32
    return %arg0, %c0_i32, %c0_i32_0 : i32, i32, i32
  }
}

</mosaic_0001>

<bundles_post_ra>
// kernel: resblock_forward.1
= control target key start
LH: loop header
LB: loop body
LE: loop exit
PB: predicated region body
PF: predicated region fallthrough
CT: control target
= control target key end

     0   :  { %s955_s18 = smov 0   ;;  %s1299_s0 = inlined_call_operand.vmem [shape: f32[2,8,256], index: 0, kind: input, shape index: {}]   ;;  %s1300_s1 = inlined_call_operand.vmem [shape: f32[16,72], index: 1, kind: input, shape index: {}]   ;;  %s1301_s2 = inlined_call_operand.vmem [shape: f32[8,72], index: 2, kind: input, shape index: {}]   ;;  %s1302_s3 = inlined_call_operand.vmem [shape: f32[8,256], index: 3, kind: input, shape index: {}]   ;;  %s1303_s4 = inlined_call_operand.vmem [shape: f32[8,256], index: 4, kind: input, shape index: {}]   ;;  %s1304_s5 = inlined_call_operand.vmem [shape: f32[2,8,256], index: 5, kind: output, shape index: {}]  }
   0x1 LB: > { %s837_s19 = sadd.s32 4294967295, %s914_s18   ;;  %p841_p0 = scmp.ge.s32.totalorder %s914_s18, 1  ;;  %s914_s18 = sphi %s955_s18, %s15_s18  }
   0x2   : > { %p187_p1 = scmp.lt.s32.totalorder %s914_s18, 3 }
   0x4   : > { %p188_p2 = pnand %p841_p0, %p187_p1 }
   0x5   : > { %p215_p3 = scmp.lt.s32.totalorder (!%p188_p2), %s837_s19, 1  ;;  %s916_s24 = smov (!%p188_p2), 16   ;;  %v922_v2 = vmov (!%p188_p2), 0.0   ;;  %v235_v3 = vlaneseq (!%p188_p2)  ;;  %v1022_v8 = vld [vmem:[%s1302_s3] sm:$0xff] (!%p188_p2)  ;;  %v1027_v9 = vld [vmem:[%s1302_s3 + $0x8] sm:$0xff] (!%p188_p2)  ;;  %vm407_vm8 = vcmask (!%p188_p2), 588800  }
   0x6   : > { %191 = sbr.rel (%p188_p2) target bundleno = 1380 (0x564), region = 40  ;;  %s917_s25 = smov (!%p188_p2), 17   ;;  %478 = vmatprep.mubr.f32.mxu0 (!%p188_p2), %v922_v2  ;;  %733 = vmatprep.mubr.f32.mxu1 (!%p188_p2), %v922_v2 }
   0x7   : > { %s918_s26 = smov (!%p188_p2), 15   ;;  %s919_s27 = smov (!%p188_p2), 1   ;;  %v1009_v4 = vshrl.u32 (!%p188_p2), %v235_v3, 7  ;;  %v1011_v5 = vand.u32 (!%p188_p2), 127, %v235_v3 }
   0x8   : > { %s920_s28 = smov (!%p188_p2), 127   ;;  %s921_s29 = smov (!%p188_p2), 113  }
   0x9   : > { %s923_s30 = smov (!%p188_p2), 112   ;;  %s924_s6 = smov (!%p188_p2), 111   ;;  %v1014_v6 = vsub.s32 (!%p188_p2), 1, %v1009_v4  ;;  %v1017_v7 = vsub.s32 (!%p188_p2), 0, %v1009_v4  ;;  %vm256_vm0 = vcmp.lt.s32.totalorder (!%p188_p2), %v1011_v5, 16  ;;  %vm237_vm1 = vcmp.lt.s32.totalorder (!%p188_p2), %v1011_v5, 17 }
   0xa   : > { %v1048_v18 = vsub.s32 (!%p188_p2), 2, %v1009_v4  ;;  %v1051_v19 = vsub.s32 (!%p188_p2), 3, %v1009_v4  ;;  %vm275_vm2 = vcmp.lt.s32.totalorder (!%p188_p2), %v1011_v5, 15  ;;  %vm294_vm3 = vcmp.lt.s32.totalorder (!%p188_p2), %v1011_v5, 1 }
   0xb   : > { %v1033_v12 = vrot.slane (!%p188_p2), %v1022_v8, %v1014_v6  ;;  %v1037_v13 = vrot.slane (!%p188_p2), %v1022_v8, %v1017_v7  ;;  %v1041_v14 = vrot.slane (!%p188_p2), %v1027_v9, %v1017_v7  ;;  %v1045_v15 = vrot.slane (!%p188_p2), %v1027_v9, %v1014_v6 }
   0xc   : > { %v1068_v32 = vsub.s32 (!%p188_p2), 4, %v1009_v4  ;;  %v1072_v33 = vrot.slane (!%p188_p2), %v1022_v8, %v1048_v18  ;;  %v1076_v34 = vrot.slane (!%p188_p2), %v1027_v9, %v1048_v18  ;;  %v1080_v35 = vrot.slane (!%p188_p2), %v1022_v8, %v1051_v19 }
   0xd   : > { %s1306_s19 = smov (!%p215_p3, %s837_s19), 1  ;;  %v1084_v36 = vrot.slane %v1027_v9, %v1051_v19  ;;  %vm315_vm4 = vcmp.lt.s32.totalorder %v1011_v5, 127  ;;  %v1112_v55 = vsub.s32 5, %v1009_v4  ;;  %v358_v58 = vsub.s32 6, %v1009_v4 }
   0xe   : > { %s851_s20 = sshll.u32 %s1306_s19, 4  ;;  %v1097_v43 = vrot.slane %v1022_v8, %v1068_v32  ;;  %v1101_v44 = vrot.slane %v1027_v9, %v1068_v32  ;;  %vm334_vm5 = vcmp.lt.s32.totalorder %v1011_v5, 113  ;;  %v377_v3 = vsub.s32 7, %v1009_v4 }
   0xf   : > { %s219_s23 = scalar_lea.vmem %s1299_s0, %s851_s20  ;;  %v1122_v63 = vrot.slane %v1022_v8, %v1112_v55  ;;  %vm353_vm6 = vcmp.lt.s32.totalorder %v1011_v5, 112  ;;  %vm372_vm7 = vcmp.lt.s32.totalorder %v1011_v5, 111 }
  0x10   : > { %v971_v0 = vld [vmem:[%s219_s23] sm:$0xff]  ;;  %v977_v1 = vld [vmem:[%s219_s23 + $0x8] sm:$0xff] }
  0x11   : > { %252 = vrot.lane.b32.xlu1 %v971_v0, %s916_s24  ;;  %231 = vrot.lane.b32.xlu0 %v971_v0, %s917_s25 }
  0x15   : > { %254 = vrot.lane.b32.xlu1 %v977_v1, %s916_s24  ;;  %233 = vrot.lane.b32.xlu0 %v977_v1, %s917_s25 }
  0x19   : > { %273 = vrot.lane.b32.xlu1 %v977_v1, %s918_s26  ;;  %271 = vrot.lane.b32.xlu0 %v971_v0, %s918_s26 }
  0x1d   : > { %292 = vrot.lane.b32.xlu1 %v977_v1, %s919_s27  ;;  %290 = vrot.lane.b32.xlu0 %v971_v0, %s919_s27 }
  0x21   : > { %313 = vrot.lane.b32.xlu1 %v977_v1, %s920_s28  ;;  %311 = vrot.lane.b32.xlu0 %v971_v0, %s920_s28 }
  0x25   : > { %332 = vrot.lane.b32.xlu1 %v977_v1, %s921_s29  ;;  %330 = vrot.lane.b32.xlu0 %v971_v0, %s921_s29 }
  0x29   : > { %351 = vrot.lane.b32.xlu1 %v977_v1, %s923_s30  ;;  %349 = vrot.lane.b32.xlu0 %v971_v0, %s923_s30 }
  0x2d   : > { %370 = vrot.lane.b32.xlu1 %v977_v1, %s924_s6  ;;  %368 = vrot.lane.b32.xlu0 %v971_v0, %s924_s6 }
  0x83   : > { %v253_v10 = vpop.permute.xlu1 %252  ;;  %v232_v11 = vpop.permute.xlu0 %231 }
  0x87   : > { %v255_v16 = vpop.permute.xlu1 %254  ;;  %v234_v17 = vpop.permute.xlu0 %233 }
  0x88   : > { %v257_v20 = vsel %vm256_vm0, %v253_v10, %v255_v16  ;;  %v258_v21 = vsel %vm256_vm0, %v255_v16, %v253_v10  ;;  %v238_v22 = vsel %vm237_vm1, %v232_v11, %v234_v17  ;;  %v239_v23 = vsel %vm237_vm1, %v234_v17, %v232_v11 }
  0x89   : > { %v267_v24 = vmul.f32 %v1033_v12, %v258_v21  ;;  %v248_v25 = vmul.f32 %v1037_v13, %v239_v23  ;;  %v249_v26 = vmul.f32 %v1041_v14, %v238_v22  ;;  %v268_v27 = vmul.f32 %v1045_v15, %v257_v20 }
  0x8a   : > { %v1127_v10 = vrot.slane %v1027_v9, %v1112_v55  ;;  %v1131_v11 = vrot.slane %v1022_v8, %v358_v58  ;;  %v1146_v22 = vrot.slane %v1027_v9, %v377_v3 }
  0x8b   : > { %v274_v28 = vpop.permute.xlu1 %273  ;;  %v272_v29 = vpop.permute.xlu0 %271  ;;  %v853_v30 = vpack.c.bf16 %v268_v27, %v249_v26  ;;  %v855_v31 = vpack.c.bf16 %v267_v24, %v248_v25  ;;  %v1153_v27 = vrot.slane %v1022_v8, %v377_v3  ;;  %v387_v8 = vld [vmem:[%s1300_s1] sm:$0xff] }
  0x8c   : > { %v276_v37 = vsel %vm275_vm2, %v272_v29, %v274_v28  ;;  %v277_v38 = vsel %vm275_vm2, %v274_v28, %v272_v29 }
  0x8d   : > { %854 = vmatprep.subr.bf16.mxu0 %v853_v30  ;;  %v286_v45 = vmul.f32 %v1072_v33, %v277_v38  ;;  %v287_v46 = vmul.f32 %v1076_v34, %v276_v37 }
  0x8e   : > { %856 = vmatpush1.bf16.msra.mxu0 %v855_v31 }
  0x8f   : > { %v293_v39 = vpop.permute.xlu1 %292  ;;  %v291_v40 = vpop.permute.xlu0 %290 }
  0x90   : > { %v295_v41 = vsel %vm294_vm3, %v291_v40, %v293_v39  ;;  %v296_v42 = vsel %vm294_vm3, %v293_v39, %v291_v40 }
  0x91   : > { %v305_v47 = vmul.f32 %v1080_v35, %v296_v42  ;;  %v306_v48 = vmul.f32 %v1084_v36, %v295_v41 }
  0x93   : > { %v314_v49 = vpop.permute.xlu1 %313  ;;  %v312_v50 = vpop.permute.xlu0 %311  ;;  %v857_v51 = vpack.c.bf16 %v306_v48, %v287_v46  ;;  %v859_v52 = vpack.c.bf16 %v305_v47, %v286_v45  ;;  %v388_v45 = vld [vmem:[%s1300_s1 + $0x8] sm:$0xff] }
  0x94   : > { %v316_v53 = vsel %vm315_vm4, %v312_v50, %v314_v49  ;;  %v317_v54 = vsel %vm315_vm4, %v314_v49, %v312_v50 }
  0x95   : > { %v326_v56 = vmul.f32 %v1097_v43, %v316_v53  ;;  %v327_v57 = vmul.f32 %v1101_v44, %v317_v54  ;;  %858 = vmatprep.subr.bf16.mxu0 %v857_v51 }
  0x96   : > { %860 = vmatpush1.bf16.msra.mxu0 %v859_v52 }
  0x97   : > { %v333_v59 = vpop.permute.xlu1 %332  ;;  %v331_v60 = vpop.permute.xlu0 %330  ;;  %v861_v61 = vpack.c.bf16 %v327_v57, %v977_v1  ;;  %v863_v62 = vpack.c.bf16 %v326_v56, %v971_v0  ;;  %v1134_v1 = vrot.slane %v1027_v9, %v358_v58 }
  0x98   : > { %v335_v0 = vsel %vm334_vm5, %v331_v60, %v333_v59  ;;  %v336_v16 = vsel %vm334_vm5, %v333_v59, %v331_v60  ;;  %v1179_v59 = vld [vmem:[%s1303_s4] sm:$0xff]  ;;  %v1184_v60 = vld [vmem:[%s1303_s4 + $0x8] sm:$0xff] }
  0x99   : > { %862 = vmatprep.subr.bf16.mxu0 %v861_v61  ;;  %v345_v23 = vmul.f32 %v1122_v63, %v335_v0  ;;  %v346_v24 = vmul.f32 %v1127_v10, %v336_v16  ;;  %v510_v61 = vrot.slane %v1179_v59, %v1017_v7  ;;  %v520_v0 = vrot.slane %v1179_v59, %v1014_v6 }
  0x9a   : > { %864 = vmatpush1.bf16.msra.mxu0 %v863_v62  ;;  %v514_v62 = vrot.slane %v1184_v60, %v1017_v7  ;;  %v524_v16 = vrot.slane %v1184_v60, %v1014_v6 }
  0x9b   : > { %v352_v4 = vpop.permute.xlu1 %351  ;;  %v350_v17 = vpop.permute.xlu0 %349 }
  0x9c   : > { %v354_v20 = vsel %vm353_vm6, %v350_v17, %v352_v4  ;;  %v355_v21 = vsel %vm353_vm6, %v352_v4, %v350_v17 }
  0x9d   : > { %v364_v25 = vmul.f32 %v1131_v11, %v354_v20  ;;  %v365_v26 = vmul.f32 %v1134_v1, %v355_v21 }
  0x9f   : > { %v371_v28 = vpop.permute.xlu1 %370  ;;  %v865_v29 = vpack.c.bf16 %v365_v26, %v346_v24  ;;  %v369_v30 = vpop.permute.xlu0 %368  ;;  %v867_v31 = vpack.c.bf16 %v364_v25, %v345_v23 }
  0xa0   : > { %v373_v37 = vsel %vm372_vm7, %v369_v30, %v371_v28  ;;  %v374_v9 = vsel %vm372_vm7, %v371_v28, %v369_v30 }
  0xa1   : > { %866 = vmatprep.subr.bf16.mxu0 %v865_v29  ;;  %v384_v38 = vmul.f32 %v1146_v22, %v374_v9  ;;  %v383_v39 = vmul.f32 %v1153_v27, %v373_v37 }
  0xa2   : > { %868 = vmatpush1.bf16.msra.mxu0 %v867_v31 }
  0xa3   : > { %430 = vmatprep.subr.mxu0 %v384_v38 }
  0xa6   : > { %431 = vmatpush1.msra.mxu0 %v383_v39 }
  0xa7   : > { %846 = vmatmul.mubr.msk.f32.vlgmr.msra.gmra.mrb[0].mxu0 %vm407_vm8, %v387_v8 }
  0xa8   : > { %484 = vmatprep.mubr.f32.mxu0 %v922_v2 }
  0xab   : > { %847 = vmatmul.mubr.msk.f32.gmra.mrb[2].mxu0 %vm407_vm8, %v388_v45 }
 0x17a   : > { %v480_v40 = vpop.f32.mrb[0].mxu0 }
 0x17b   : > { %v482_v41 = vpop.f32.mrb[1].mxu0 }
 0x17c   : > { %v491_v42 = vadd.f32 %v482_v41, %v480_v40 }
 0x17e   : > { %492 = vadd.xlane.f32.xlu0 %v491_v42  ;;  %v1170_v53 = vpop.f32.mrb[2].mxu0 }
 0x17f   : > { %v1172_v2 = vpop.f32.mrb[3].mxu0 }
 0x180   : > { %v529_v54 = vadd.f32 %v1172_v2, %v1170_v53 }
 0x20b   : > { %v493_v46 = vpop.xlane.xlu0 %492 }
 0x20c   : > { %v494_v47 = vmul.f32 0.00390625, %v493_v46 }
 0x20e   : > { %v495_v48 = vsub.f32 %v480_v40, %v494_v47  ;;  %v496_v49 = vsub.f32 %v482_v41, %v494_v47 }
 0x210   : > { %v497_v50 = vmul.f32 %v495_v48, %v495_v48  ;;  %v498_v51 = vmul.f32 %v496_v49, %v496_v49 }
 0x212   : > { %v499_v52 = vadd.f32 %v498_v51, %v497_v50 }
 0x214   : > { %500 = vadd.xlane.f32.xlu1 %v499_v52 }
 0x2a1   : > { %v501_v56 = vpop.xlane.xlu1 %500 }
 0x2a2   : > { %v502_v57 = vmul.f32 0.00390625, %v501_v56 }
 0x2a4   : > { %v503_v58 = vadd.f32 1e-05, %v502_v57 }
 0x2a6   : > { %902 = vrsqrt.f32 %v503_v58 }
 0x2b0   : > { %v903_v3 = vpop.eup %902 }
 0x2b1   : > { %v505_v4 = vmul.f32 %v903_v3, %v495_v48  ;;  %v506_v17 = vmul.f32 %v903_v3, %v496_v49 }
 0x2b3   : > { %v515_v20 = vmul.f32 %v510_v61, %v505_v4  ;;  %v516_v21 = vmul.f32 %v514_v62, %v506_v17 }
 0x2b5   : > { %v525_v23 = vadd.f32 %v520_v0, %v515_v20  ;;  %v526_v24 = vadd.f32 %v524_v16, %v516_v21 }
 0x2b7   : > { %v1194_v25 = vmax.f32 %v525_v23, 0.0  ;;  %v528_v26 = vmax.f32 %v526_v24, 0.0 }
 0x2b9   : > { %567 = vrot.lane.b32.xlu1 %v528_v26, %s917_s25  ;;  %565 = vrot.lane.b32.xlu0 %v1194_v25, %s917_s25 }
 0x2bd   : > { %577 = vrot.lane.b32.xlu1 %v528_v26, %s916_s24  ;;  %575 = vrot.lane.b32.xlu0 %v1194_v25, %s916_s24 }
 0x2c1   : > { %587 = vrot.lane.b32.xlu1 %v528_v26, %s918_s26  ;;  %585 = vrot.lane.b32.xlu0 %v1194_v25, %s918_s26  ;;  %s224_s26 = scalar_lea.vmem %s1304_s5, %s851_s20 }
 0x2c5   : > { %597 = vrot.lane.b32.xlu1 %v528_v26, %s919_s27  ;;  %595 = vrot.lane.b32.xlu0 %v1194_v25, %s919_s27 }
 0x2c9   : > { %609 = vrot.lane.b32.xlu1 %v528_v26, %s920_s28  ;;  %607 = vrot.lane.b32.xlu0 %v1194_v25, %s920_s28 }
 0x2cd   : > { %619 = vrot.lane.b32.xlu1 %v528_v26, %s921_s29  ;;  %617 = vrot.lane.b32.xlu0 %v1194_v25, %s921_s29 }
 0x2d1   : > { %629 = vrot.lane.b32.xlu1 %v528_v26, %s923_s30  ;;  %627 = vrot.lane.b32.xlu0 %v1194_v25, %s923_s30 }
 0x2d5   : > { %639 = vrot.lane.b32.xlu1 %v528_v26, %s924_s6  ;;  %637 = vrot.lane.b32.xlu0 %v1194_v25, %s924_s6 }
 0x2f4   : > { %530 = vadd.xlane.f32.xlu0 %v529_v54 }
 0x32b   : > { %v568_v6 = vpop.permute.xlu1 %567  ;;  %v566_v7 = vpop.permute.xlu0 %565 }
 0x32c   : > { %v569_v28 = vsel %vm237_vm1, %v566_v7, %v568_v6  ;;  %v570_v29 = vsel %vm237_vm1, %v568_v6, %v566_v7 }
 0x32d   : > { %v571_v38 = vmul.f32 %v570_v29, %v1037_v13  ;;  %v572_v8 = vmul.f32 %v569_v28, %v1041_v14 }
 0x32f   : > { %v578_v30 = vpop.permute.xlu1 %577  ;;  %v576_v31 = vpop.permute.xlu0 %575 }
 0x330   : > { %v579_v37 = vsel %vm256_vm0, %v576_v31, %v578_v30  ;;  %v580_v9 = vsel %vm256_vm0, %v578_v30, %v576_v31 }
 0x331   : > { %v581_v39 = vmul.f32 %v580_v9, %v1033_v12  ;;  %v582_v40 = vmul.f32 %v579_v37, %v1045_v15 }
 0x333   : > { %v588_v41 = vpop.permute.xlu1 %587  ;;  %v586_v42 = vpop.permute.xlu0 %585  ;;  %v869_v45 = vpack.c.bf16 %v582_v40, %v572_v8  ;;  %v871_v46 = vpack.c.bf16 %v581_v39, %v571_v38 }
 0x334   : > { %v589_v47 = vsel %vm275_vm2, %v586_v42, %v588_v41  ;;  %v590_v48 = vsel %vm275_vm2, %v588_v41, %v586_v42 }
 0x335   : > { %870 = vmatprep.subr.bf16.mxu1 %v869_v45  ;;  %v591_v15 = vmul.f32 %v590_v48, %v1072_v33  ;;  %v592_v50 = vmul.f32 %v589_v47, %v1076_v34 }
 0x336   : > { %872 = vmatpush1.bf16.msra.mxu1 %v871_v46 }
 0x337   : > { %v598_v49 = vpop.permute.xlu1 %597  ;;  %v596_v13 = vpop.permute.xlu0 %595 }
 0x338   : > { %v599_v12 = vsel %vm294_vm3, %v596_v13, %v598_v49  ;;  %v600_v14 = vsel %vm294_vm3, %v598_v49, %v596_v13 }
 0x339   : > { %v601_v51 = vmul.f32 %v600_v14, %v1080_v35  ;;  %v602_v52 = vmul.f32 %v599_v12, %v1084_v36 }
 0x33b   : > { %v610_v54 = vpop.permute.xlu1 %609  ;;  %v608_v56 = vpop.permute.xlu0 %607  ;;  %v873_v57 = vpack.c.bf16 %v602_v52, %v592_v50  ;;  %v875_v58 = vpack.c.bf16 %v601_v51, %v591_v15  ;;  %v548_v50 = vrot.slane %v1179_v59, %v1048_v18  ;;  %v552_v51 = vrot.slane %v1184_v60, %v1048_v18 }
 0x33c   : > { %v611_v61 = vsel %vm315_vm4, %v608_v56, %v610_v54  ;;  %v612_v62 = vsel %vm315_vm4, %v610_v54, %v608_v56  ;;  %v759_v56 = vrot.slane %v1179_v59, %v1068_v32  ;;  %v769_v18 = vrot.slane %v1179_v59, %v1112_v55 }
 0x33d   : > { %v613_v3 = vmul.f32 %v611_v61, %v1097_v43  ;;  %v614_v33 = vmul.f32 %v612_v62, %v1101_v44  ;;  %874 = vmatprep.subr.bf16.mxu1 %v873_v57  ;;  %v763_v57 = vrot.slane %v1184_v60, %v1068_v32  ;;  %v558_v61 = vrot.slane %v1179_v59, %v1051_v19 }
 0x33e   : > { %876 = vmatpush1.bf16.msra.mxu1 %v875_v58  ;;  %v562_v62 = vrot.slane %v1184_v60, %v1051_v19 }
 0x33f   : > { %v620_v34 = vpop.permute.xlu1 %619  ;;  %v618_v35 = vpop.permute.xlu0 %617  ;;  %v877_v0 = vpack.c.bf16 %v614_v33, %v528_v26  ;;  %v879_v36 = vpack.c.bf16 %v613_v3, %v1194_v25 }
 0x340   : > { %v621_v16 = vsel %vm334_vm5, %v618_v35, %v620_v34  ;;  %v622_v4 = vsel %vm334_vm5, %v620_v34, %v618_v35  ;;  %v773_v34 = vrot.slane %v1184_v60, %v1112_v55 }
 0x341   : > { %878 = vmatprep.subr.bf16.mxu1 %v877_v0  ;;  %v623_v21 = vmul.f32 %v621_v16, %v1122_v63  ;;  %v624_v23 = vmul.f32 %v622_v4, %v1127_v10  ;;  %v647_v10 = vld [vmem:[%s1301_s2] sm:$0xff] }
 0x342   : > { %880 = vmatpush1.bf16.msra.mxu1 %v879_v36 }
 0x343   : > { %v630_v17 = vpop.permute.xlu1 %629  ;;  %v628_v20 = vpop.permute.xlu0 %627 }
 0x344   : > { %v631_v43 = vsel %vm353_vm6, %v628_v20, %v630_v17  ;;  %v632_v44 = vsel %vm353_vm6, %v630_v17, %v628_v20 }
 0x345   : > { %v633_v24 = vmul.f32 %v631_v43, %v1131_v11  ;;  %v634_v25 = vmul.f32 %v632_v44, %v1134_v1 }
 0x347   : > { %v640_v26 = vpop.permute.xlu1 %639  ;;  %v638_v6 = vpop.permute.xlu0 %637  ;;  %v881_v7 = vpack.c.bf16 %v634_v25, %v624_v23  ;;  %v883_v28 = vpack.c.bf16 %v633_v24, %v623_v21 }
 0x348   : > { %v642_v29 = vsel %vm372_vm7, %v640_v26, %v638_v6  ;;  %v641_v30 = vsel %vm372_vm7, %v638_v6, %v640_v26 }
 0x349   : > { %v644_v31 = vmul.f32 %v642_v29, %v1146_v22  ;;  %882 = vmatprep.subr.bf16.mxu1 %v881_v7  ;;  %v643_v63 = vmul.f32 %v641_v30, %v1153_v27 }
 0x34a   : > { %884 = vmatpush1.bf16.msra.mxu1 %v883_v28 }
 0x34b   : > { %685 = vmatprep.subr.mxu1 %v644_v31 }
 0x34e   : > { %686 = vmatpush1.msra.mxu1 %v643_v63 }
 0x34f   : > { %848 = vmatmul.mubr.msk.f32.vlgmr.msra.gmra.mrb[0].mxu1 %vm407_vm8, %v647_v10 }
 0x381   : > { %v531_v11 = vpop.xlane.xlu0 %530 }
 0x382   : > { %v532_v1 = vmul.f32 0.00390625, %v531_v11 }
 0x384   : > { %v533_v37 = vsub.f32 %v1170_v53, %v532_v1  ;;  %v534_v5 = vsub.f32 %v1172_v2, %v532_v1 }
 0x386   : > { %v535_v9 = vmul.f32 %v533_v37, %v533_v37  ;;  %v536_v22 = vmul.f32 %v534_v5, %v534_v5 }
 0x388   : > { %v537_v38 = vadd.f32 %v536_v22, %v535_v9 }
 0x38a   : > { %538 = vadd.xlane.f32.xlu0 %v537_v38 }
 0x417   : > { %v539_v49 = vpop.xlane.xlu0 %538 }
 0x418   : > { %v540_v53 = vmul.f32 0.00390625, %v539_v49 }
 0x41a   : > { %v541_v13 = vadd.f32 1e-05, %v540_v53 }
 0x41c   : > { %904 = vrsqrt.f32 %v541_v13 }
 0x422   : > { %v735_v39 = vpop.f32.mrb[0].mxu1 }
 0x423   : > { %v737_v8 = vpop.f32.mrb[1].mxu1 }
 0x424   : > { %v740_v27 = vadd.f32 %v737_v8, %v735_v39 }
 0x426   : > { %741 = vadd.xlane.f32.xlu1 %v740_v27  ;;  %v905_v15 = vpop.eup %904 }
 0x427   : > { %v543_v52 = vmul.f32 %v905_v15, %v533_v37  ;;  %v544_v54 = vmul.f32 %v905_v15, %v534_v5 }
 0x429   : > { %v553_v3 = vmul.f32 %v548_v50, %v543_v52  ;;  %v554_v33 = vmul.f32 %v552_v51, %v544_v54 }
 0x42b   : > { %v563_v16 = vadd.f32 %v558_v61, %v553_v3  ;;  %v564_v4 = vadd.f32 %v562_v62, %v554_v33 }
 0x4b3   : > { %v742_v40 = vpop.xlane.xlu1 %741 }
 0x4b4   : > { %v743_v41 = vmul.f32 0.00390625, %v742_v40 }
 0x4b6   : > { %v744_v42 = vsub.f32 %v735_v39, %v743_v41  ;;  %v745_v45 = vsub.f32 %v737_v8, %v743_v41 }
 0x4b8   : > { %v746_v46 = vmul.f32 %v744_v42, %v744_v42  ;;  %v747_v47 = vmul.f32 %v745_v45, %v745_v45 }
 0x4ba   : > { %v748_v48 = vadd.f32 %v747_v47, %v746_v46 }
 0x4bc   : > { %749 = vadd.xlane.f32.xlu0 %v748_v48 }
 0x549   : > { %v750_v2 = vpop.xlane.xlu0 %749 }
 0x54a   : > { %v751_v12 = vmul.f32 0.00390625, %v750_v2 }
 0x54c   : > { %v752_v14 = vadd.f32 1e-05, %v751_v12 }
 0x54e   : > { %906 = vrsqrt.f32 %v752_v14 }
 0x558   : > { %v907_v58 = vpop.eup %906 }
 0x559   : > { %v754_v35 = vmul.f32 %v907_v58, %v744_v42  ;;  %v755_v0 = vmul.f32 %v907_v58, %v745_v45 }
 0x55b   : > { %v764_v36 = vmul.f32 %v759_v56, %v754_v35  ;;  %v765_v32 = vmul.f32 %v763_v57, %v755_v0 }
 0x55d   : > { %v774_v17 = vadd.f32 %v769_v18, %v764_v36  ;;  %v775_v20 = vadd.f32 %v773_v34, %v765_v32 }
 0x55f   : > { %v776_v43 = vadd.f32 %v774_v17, %v563_v16  ;;  %v777_v44 = vadd.f32 %v775_v20, %v564_v4 }
 0x561   : > { %v778_v19 = vmax.f32 %v776_v43, 0.0  ;;  %v779_v59 = vmax.f32 %v777_v44, 0.0 }
 0x563   : > { %780 = vst [vmem:[%s224_s26] sm:$0xff] %v778_v19  ;;  %781 = vst [vmem:[%s224_s26 + $0x8] sm:$0xff] %v779_v59 }
 0x564 PF: > { %s15_s18 = sadd.s32 1, %s914_s18  }
 0x565   : > { %p12_p4 = scmp.ge.s32.totalorder %s15_s18, 4  }
 0x567   :  { %14 = sbr.rel (!%p12_p4) target bundleno = 1 (0x1), region = 70 }

</bundles_post_ra>
